<compile_context>
chip_gen: v6e
topology: v6e:2x2x1
jax: 0.10.0
libtpu: 0.0.40
codegen_flags: <defaults>
</compile_context>

<pallas_src>
import functools

import jax
import jax.numpy as jnp
from jax.experimental import pallas as pl
from jax.experimental.pallas import tpu as pltpu


HIDDEN = 128
OUT_PAD = 128          # lane-dense width for the final (padded) layer
MAX_BATCH_TILE = 512   # rows per grid step (f32 activations: ~0.3 MiB/tile)


def _round_up(x, m):
    return ((x + m - 1) // m) * m


def critic_kernel(x_ref,
                  w1_ref, b1_ref,
                  w2_ref, b2_ref,
                  w3_ref, b3_ref,
                  w4_ref, b4_ref,
                  out_ref):
    """Fused 4-layer MLP value head: 3x (Linear+ReLU) -> Linear(padded) -> clamp."""
    x = x_ref[...]

    h = jnp.dot(x, w1_ref[...], preferred_element_type=jnp.float32) + b1_ref[...]
    h = jnp.maximum(h, 0.0)

    h = jnp.dot(h, w2_ref[...], preferred_element_type=jnp.float32) + b2_ref[...]
    h = jnp.maximum(h, 0.0)

    h = jnp.dot(h, w3_ref[...], preferred_element_type=jnp.float32) + b3_ref[...]
    h = jnp.maximum(h, 0.0)

    v = jnp.dot(h, w4_ref[...], preferred_element_type=jnp.float32) + b4_ref[...]

    # value.clamp(min=1e-06, max=5); full (TB, 128) lane-dense store.
    out_ref[...] = jnp.clip(v, 1e-6, 5.0)


@functools.partial(jax.jit, static_argnames=("block_batch",))
def critic_forward(x, params, *, block_batch=MAX_BATCH_TILE):
    """Run the fused Pallas kernel.

    x: [B, F] float32
    params: dict of weights (pre-transposed [in, out]) and biases ([1, out]).
    Returns: [B, 1] float32 state value.
    """
    B, F = x.shape

    # --- lane-dense final layer: zero-pad [128,1] -> [128,128], [1,1] -> [1,128]
    w4 = params["w4"]
    b4 = params["b4"]
    w4p = jnp.pad(w4, ((0, 0), (0, OUT_PAD - w4.shape[1])))
    b4p = jnp.pad(b4, ((0, 0), (0, OUT_PAD - b4.shape[1])))

    # --- batch tile; pad B so the grid divides evenly (no partial tail block)
    tb = min(block_batch, _round_up(max(B, 1), 8))
    b_pad = _round_up(B, tb)
    if b_pad != B:
        x = jnp.pad(x, ((0, b_pad - B), (0, 0)))
    grid = (b_pad // tb,)

    def resident(shape):
        # weights/biases: same block every grid step -> DMA'd once, stay in VMEM
        return pl.BlockSpec(shape, lambda i: (0, 0))

    out = pl.pallas_call(
        critic_kernel,
        out_shape=jax.ShapeDtypeStruct((b_pad, OUT_PAD), jnp.float32),
        grid=grid,
        in_specs=[
            pl.BlockSpec((tb, F), lambda i: (i, 0)),             # x, streamed over batch
            resident((F, HIDDEN)), resident((1, HIDDEN)),        # fc1
            resident((HIDDEN, HIDDEN)), resident((1, HIDDEN)),   # fc3
            resident((HIDDEN, HIDDEN)), resident((1, HIDDEN)),   # fc5
            resident((HIDDEN, OUT_PAD)), resident((1, OUT_PAD)),  # state_value (padded)
        ],
        out_specs=pl.BlockSpec((tb, OUT_PAD), lambda i: (i, 0)),
        compiler_params=pltpu.CompilerParams(
            dimension_semantics=("parallel",),
        ),
    )(
        x,
        params["w1"], params["b1"],
        params["w2"], params["b2"],
        params["w3"], params["b3"],
        w4p, b4p,
    )
    # drop batch padding and the 127 zero-padded output lanes
    return out[:B, :1]


def init_critic_params(key, number_of_inputs):
    """Deterministic init mimicking PyTorch nn.Linear (uniform +-1/sqrt(fan_in))."""
    def linear(key, fan_in, fan_out):
        kw, kb = jax.random.split(key)
        bound = 1.0 / jnp.sqrt(jnp.float32(fan_in))
        # store transposed: [in, out]
        w = jax.random.uniform(kw, (fan_in, fan_out), jnp.float32, -bound, bound)
        b = jax.random.uniform(kb, (1, fan_out), jnp.float32, -bound, bound)
        return w, b

    k1, k2, k3, k4 = jax.random.split(key, 4)
    w1, b1 = linear(k1, number_of_inputs, HIDDEN)   # fc1
    w2, b2 = linear(k2, HIDDEN, HIDDEN)             # fc3
    w3, b3 = linear(k3, HIDDEN, HIDDEN)             # fc5
    w4, b4 = linear(k4, HIDDEN, 1)                  # state_value
    return {"w1": w1, "b1": b1, "w2": w2, "b2": b2,
            "w3": w3, "b3": b3, "w4": w4, "b4": b4}


def critic_reference(x, params):
    """Plain-JAX reference for correctness checking."""
    h = jnp.maximum(x @ params["w1"] + params["b1"], 0.0)
    h = jnp.maximum(h @ params["w2"] + params["b2"], 0.0)
    h = jnp.maximum(h @ params["w3"] + params["b3"], 0.0)
    v = h @ params["w4"] + params["b4"]
    return jnp.clip(v, 1e-6, 5.0)


if __name__ == "__main__":
    key = jax.random.PRNGKey(0)
    k_param, k_x, k_x2 = jax.random.split(key, 3)

    number_of_inputs = 8  # small state vector for the 4-wheel supervisor
    params = init_critic_params(k_param, number_of_inputs)

    # Small shape consistent with the module (B=2 states).
    # NOTE: at B=2 the kernel is launch/DMA-latency bound; real speedups come
    # from batching many env states/timesteps into one call (exercised below).
    batch = 2
    x = jax.random.normal(k_x, (batch, number_of_inputs), jnp.float32)
    out = jax.block_until_ready(critic_forward(x, params))
    ref = critic_reference(x, params)
    assert out.shape == (batch, 1), out.shape
    assert jnp.allclose(out, ref, atol=1e-5, rtol=1e-5), (out, ref)

    # Larger, non-tile-multiple batch to exercise the multi-step grid +
    # batch-padding path (1000 -> padded to 1024, grid=(2,)).
    big_batch = 1000
    x_big = jax.random.normal(k_x2, (big_batch, number_of_inputs), jnp.float32)
    out_big = jax.block_until_ready(critic_forward(x_big, params))
    ref_big = critic_reference(x_big, params)
    assert out_big.shape == (big_batch, 1), out_big.shape
    assert jnp.allclose(out_big, ref_big, atol=1e-5, rtol=1e-5)

    print("KERNEL_OK")
</pallas_src>

<mosaic_0001>
module attributes {stable_mosaic.version = 11 : i64} {
  func.func @critic_kernel(%arg0: i32, %arg1: memref<8x8xf32, #tpu.memory_space<vmem>>, %arg2: memref<8x128xf32, #tpu.memory_space<vmem>>, %arg3: memref<1x128xf32, #tpu.memory_space<vmem>>, %arg4: memref<128x128xf32, #tpu.memory_space<vmem>>, %arg5: memref<1x128xf32, #tpu.memory_space<vmem>>, %arg6: memref<128x128xf32, #tpu.memory_space<vmem>>, %arg7: memref<1x128xf32, #tpu.memory_space<vmem>>, %arg8: memref<128x128xf32, #tpu.memory_space<vmem>>, %arg9: memref<1x128xf32, #tpu.memory_space<vmem>>, %arg10: memref<8x128xf32, #tpu.memory_space<vmem>>) attributes {dimension_semantics = [#tpu.dimension_semantics<parallel>], iteration_bounds = array<i64: 1>, scalar_prefetch = 0 : i64, scratch_operands = 0 : i64, tpu.core_type = #tpu.core_type<tc>, window_params = [{transform_indices = @transform_0, window_bounds = array<i64: 8, 8>}, {pipeline_mode = #tpu.pipeline_mode<synchronous>, transform_indices = @transform_1, window_bounds = array<i64: 8, 128>}, {pipeline_mode = #tpu.pipeline_mode<synchronous>, transform_indices = @transform_2, window_bounds = array<i64: 1, 128>}, {pipeline_mode = #tpu.pipeline_mode<synchronous>, transform_indices = @transform_3, window_bounds = array<i64: 128, 128>}, {pipeline_mode = #tpu.pipeline_mode<synchronous>, transform_indices = @transform_4, window_bounds = array<i64: 1, 128>}, {pipeline_mode = #tpu.pipeline_mode<synchronous>, transform_indices = @transform_5, window_bounds = array<i64: 128, 128>}, {pipeline_mode = #tpu.pipeline_mode<synchronous>, transform_indices = @transform_6, window_bounds = array<i64: 1, 128>}, {pipeline_mode = #tpu.pipeline_mode<synchronous>, transform_indices = @transform_7, window_bounds = array<i64: 128, 128>}, {pipeline_mode = #tpu.pipeline_mode<synchronous>, transform_indices = @transform_8, window_bounds = array<i64: 1, 128>}, {transform_indices = @transform_9, window_bounds = array<i64: 8, 128>}]} {
    %c0 = arith.constant 0 : index
    %c0_0 = arith.constant 0 : index
    %0 = vector.load %arg1[%c0, %c0_0] : memref<8x8xf32, #tpu.memory_space<vmem>>, vector<8x8xf32>
    %c0_1 = arith.constant 0 : index
    %c0_2 = arith.constant 0 : index
    %1 = vector.load %arg2[%c0_1, %c0_2] : memref<8x128xf32, #tpu.memory_space<vmem>>, vector<8x128xf32>
    %cst = arith.constant dense<0.000000e+00> : vector<8x128xf32>
    %2 = tpu.matmul %0, %1, %cst {dimension_numbers = #tpu.dot_dimension_numbers<[1], [0], [0], [1], [0, 0, 1, 1], [], []>} : vector<8x8xf32>, vector<8x128xf32>, vector<8x128xf32> -> vector<8x128xf32>
    %c0_3 = arith.constant 0 : index
    %c0_4 = arith.constant 0 : index
    %3 = vector.load %arg3[%c0_3, %c0_4] : memref<1x128xf32, #tpu.memory_space<vmem>>, vector<1x128xf32>
    %4 = vector.broadcast %3 : vector<1x128xf32> to vector<8x128xf32>
    %5 = arith.addf %2, %4 : vector<8x128xf32>
    %cst_5 = arith.constant 0.000000e+00 : f32
    %6 = vector.broadcast %cst_5 : f32 to vector<8x128xf32>
    %7 = arith.maximumf %5, %6 : vector<8x128xf32>
    %c0_6 = arith.constant 0 : index
    %c0_7 = arith.constant 0 : index
    %8 = vector.load %arg4[%c0_6, %c0_7] : memref<128x128xf32, #tpu.memory_space<vmem>>, vector<128x128xf32>
    %cst_8 = arith.constant dense<0.000000e+00> : vector<8x128xf32>
    %9 = tpu.matmul %7, %8, %cst_8 {dimension_numbers = #tpu.dot_dimension_numbers<[1], [0], [0], [1], [0, 0, 1, 1], [], []>} : vector<8x128xf32>, vector<128x128xf32>, vector<8x128xf32> -> vector<8x128xf32>
    %c0_9 = arith.constant 0 : index
    %c0_10 = arith.constant 0 : index
    %10 = vector.load %arg5[%c0_9, %c0_10] : memref<1x128xf32, #tpu.memory_space<vmem>>, vector<1x128xf32>
    %11 = vector.broadcast %10 : vector<1x128xf32> to vector<8x128xf32>
    %12 = arith.addf %9, %11 : vector<8x128xf32>
    %cst_11 = arith.constant 0.000000e+00 : f32
    %13 = vector.broadcast %cst_11 : f32 to vector<8x128xf32>
    %14 = arith.maximumf %12, %13 : vector<8x128xf32>
    %c0_12 = arith.constant 0 : index
    %c0_13 = arith.constant 0 : index
    %15 = vector.load %arg6[%c0_12, %c0_13] : memref<128x128xf32, #tpu.memory_space<vmem>>, vector<128x128xf32>
    %cst_14 = arith.constant dense<0.000000e+00> : vector<8x128xf32>
    %16 = tpu.matmul %14, %15, %cst_14 {dimension_numbers = #tpu.dot_dimension_numbers<[1], [0], [0], [1], [0, 0, 1, 1], [], []>} : vector<8x128xf32>, vector<128x128xf32>, vector<8x128xf32> -> vector<8x128xf32>
    %c0_15 = arith.constant 0 : index
    %c0_16 = arith.constant 0 : index
    %17 = vector.load %arg7[%c0_15, %c0_16] : memref<1x128xf32, #tpu.memory_space<vmem>>, vector<1x128xf32>
    %18 = vector.broadcast %17 : vector<1x128xf32> to vector<8x128xf32>
    %19 = arith.addf %16, %18 : vector<8x128xf32>
    %cst_17 = arith.constant 0.000000e+00 : f32
    %20 = vector.broadcast %cst_17 : f32 to vector<8x128xf32>
    %21 = arith.maximumf %19, %20 : vector<8x128xf32>
    %c0_18 = arith.constant 0 : index
    %c0_19 = arith.constant 0 : index
    %22 = vector.load %arg8[%c0_18, %c0_19] : memref<128x128xf32, #tpu.memory_space<vmem>>, vector<128x128xf32>
    %cst_20 = arith.constant dense<0.000000e+00> : vector<8x128xf32>
    %23 = tpu.matmul %21, %22, %cst_20 {dimension_numbers = #tpu.dot_dimension_numbers<[1], [0], [0], [1], [0, 0, 1, 1], [], []>} : vector<8x128xf32>, vector<128x128xf32>, vector<8x128xf32> -> vector<8x128xf32>
    %c0_21 = arith.constant 0 : index
    %c0_22 = arith.constant 0 : index
    %24 = vector.load %arg9[%c0_21, %c0_22] : memref<1x128xf32, #tpu.memory_space<vmem>>, vector<1x128xf32>
    %25 = vector.broadcast %24 : vector<1x128xf32> to vector<8x128xf32>
    %26 = arith.addf %23, %25 : vector<8x128xf32>
    %cst_23 = arith.constant 9.99999997E-7 : f32
    %cst_24 = arith.constant 5.000000e+00 : f32
    %27 = vector.broadcast %cst_23 : f32 to vector<8x128xf32>
    %28 = arith.maximumf %27, %26 : vector<8x128xf32>
    %29 = vector.broadcast %cst_24 : f32 to vector<8x128xf32>
    %30 = arith.minimumf %29, %28 : vector<8x128xf32>
    %c0_25 = arith.constant 0 : index
    %c0_26 = arith.constant 0 : index
    %31 = vector.load %arg10[%c0_25, %c0_26] : memref<8x128xf32, #tpu.memory_space<vmem>>, vector<8x128xf32>
    tpu.vector_store %arg10[%c0_25, %c0_26], %30 {strides = array<i32>} : memref<8x128xf32, #tpu.memory_space<vmem>>, vector<8x128xf32>,
    return
  }
  func.func @transform_0(%arg0: i32) -> (i32, i32) {
    %c0_i32 = arith.constant 0 : i32
    %c0_i32_0 = arith.constant 0 : i32
    return %arg0, %c0_i32 : i32, i32
  }
  func.func @transform_1(%arg0: i32) -> (i32, i32) {
    %c0_i32 = arith.constant 0 : i32
    %c0_i32_0 = arith.constant 0 : i32
    %c0_i32_1 = arith.constant 0 : i32
    return %c0_i32, %c0_i32_0 : i32, i32
  }
  func.func @transform_2(%arg0: i32) -> (i32, i32) {
    %c0_i32 = arith.constant 0 : i32
    %c0_i32_0 = arith.constant 0 : i32
    %c0_i32_1 = arith.constant 0 : i32
    return %c0_i32, %c0_i32_0 : i32, i32
  }
  func.func @transform_3(%arg0: i32) -> (i32, i32) {
    %c0_i32 = arith.constant 0 : i32
    %c0_i32_0 = arith.constant 0 : i32
    %c0_i32_1 = arith.constant 0 : i32
    return %c0_i32, %c0_i32_0 : i32, i32
  }
  func.func @transform_4(%arg0: i32) -> (i32, i32) {
    %c0_i32 = arith.constant 0 : i32
    %c0_i32_0 = arith.constant 0 : i32
    %c0_i32_1 = arith.constant 0 : i32
    return %c0_i32, %c0_i32_0 : i32, i32
  }
  func.func @transform_5(%arg0: i32) -> (i32, i32) {
    %c0_i32 = arith.constant 0 : i32
    %c0_i32_0 = arith.constant 0 : i32
    %c0_i32_1 = arith.constant 0 : i32
    return %c0_i32, %c0_i32_0 : i32, i32
  }
  func.func @transform_6(%arg0: i32) -> (i32, i32) {
    %c0_i32 = arith.constant 0 : i32
    %c0_i32_0 = arith.constant 0 : i32
    %c0_i32_1 = arith.constant 0 : i32
    return %c0_i32, %c0_i32_0 : i32, i32
  }
  func.func @transform_7(%arg0: i32) -> (i32, i32) {
    %c0_i32 = arith.constant 0 : i32
    %c0_i32_0 = arith.constant 0 : i32
    %c0_i32_1 = arith.constant 0 : i32
    return %c0_i32, %c0_i32_0 : i32, i32
  }
  func.func @transform_8(%arg0: i32) -> (i32, i32) {
    %c0_i32 = arith.constant 0 : i32
    %c0_i32_0 = arith.constant 0 : i32
    %c0_i32_1 = arith.constant 0 : i32
    return %c0_i32, %c0_i32_0 : i32, i32
  }
  func.func @transform_9(%arg0: i32) -> (i32, i32) {
    %c0_i32 = arith.constant 0 : i32
    %c0_i32_0 = arith.constant 0 : i32
    return %arg0, %c0_i32 : i32, i32
  }
}

</mosaic_0001>

<bundles_post_ra>
// kernel: critic_forward.1
= control target key start
LH: loop header
LB: loop body
LE: loop exit
PB: predicated region body
PF: predicated region fallthrough
CT: control target
= control target key end

     0   :  { %vm41_vm0 = vcmask 64512   ;;  %v574_v0 = vmov 0.0   ;;  %vm575_vm1 = vmmov 0   ;;  %s848_s1 = inlined_call_operand.vmem [shape: f32[8,128], index: 1, kind: input, shape index: {}]   ;;  %s849_s0 = inlined_call_operand.vmem [shape: f32[8,8], index: 0, kind: input, shape index: {}]   ;;  %s850_s3 = inlined_call_operand.vmem [shape: f32[128,128], index: 3, kind: input, shape index: {}]   ;;  %s851_s5 = inlined_call_operand.vmem [shape: f32[128,128], index: 5, kind: input, shape index: {}]   ;;  %s852_s2 = inlined_call_operand.vmem [shape: f32[1,128], index: 2, kind: input, shape index: {}]   ;;  %s853_s7 = inlined_call_operand.vmem [shape: f32[128,128], index: 7, kind: input, shape index: {}]   ;;  %s854_s4 = inlined_call_operand.vmem [shape: f32[1,128], index: 4, kind: input, shape index: {}]   ;;  %s855_s6 = inlined_call_operand.vmem [shape: f32[1,128], index: 6, kind: input, shape index: {}]   ;;  %s856_s8 = inlined_call_operand.vmem [shape: f32[1,128], index: 8, kind: input, shape index: {}]   ;;  %s857_s9 = inlined_call_operand.vmem [shape: f32[8,128], index: 9, kind: output, shape index: {}]  }
   0x1   :  { %462 = vmatprep.subr.mxu0 %v574_v0  ;;  %v33_v1 = vld [vmem:[%s848_s1] sm:$0xff]  ;;  %464 = vmatprep.mubr.msk.f32.mxu0 %vm575_vm1, %v574_v0  ;;  %v131_v3 = vld [vmem:[%s850_s3 + $0x78] sm:$0xff]  ;;  %v130_v4 = vld [vmem:[%s850_s3 + $0x70] sm:$0xff] }
   0x2   :  { %v32_v2 = vld [vmem:[%s849_s0] sm:$0xff]  ;;  %463 = vmatpush3.msra.mxu0 %v33_v1  ;;  %467 = vmatprep.subr.mxu1 %v574_v0  ;;  %v129_v5 = vld [vmem:[%s850_s3 + $0x68] sm:$0xff]  ;;  %v127_v7 = vld [vmem:[%s850_s3 + $0x58] sm:$0xff] }
   0x3   :  { %465 = vmatmul.mubr.msk.f32.vlgmr.msra.gmra.mxu0 %vm41_vm0, %v32_v2  ;;  %468 = vmatpush3.msra.mxu1 %v131_v3  ;;  %v128_v6 = vld [vmem:[%s850_s3 + $0x60] sm:$0xff]  ;;  %v126_v8 = vld [vmem:[%s850_s3 + $0x50] sm:$0xff]  ;;  %v125_v9 = vld [vmem:[%s850_s3 + $0x48] sm:$0xff] }
   0x4   :  { %469 = vmatprep.subr.mxu1 %v574_v0  ;;  %499 = vmatprep.mubr.msk.f32.mxu1 %vm575_vm1, %v574_v0  ;;  %v124_v10 = vld [vmem:[%s850_s3 + $0x40] sm:$0xff]  ;;  %v123_v11 = vld [vmem:[%s850_s3 + $0x38] sm:$0xff]  ;;  %v122_v12 = vld [vmem:[%s850_s3 + $0x30] sm:$0xff] }
   0x5   :  { %470 = vmatpush3.msra.mxu1 %v130_v4  ;;  %502 = vmatprep.subr.mxu0 %v574_v0  ;;  %v121_v13 = vld [vmem:[%s850_s3 + $0x28] sm:$0xff]  ;;  %v120_v14 = vld [vmem:[%s850_s3 + $0x20] sm:$0xff]  ;;  %v119_v15 = vld [vmem:[%s850_s3 + $0x18] sm:$0xff] }
   0x6   :  { %471 = vmatprep.subr.mxu1 %v574_v0  ;;  %534 = vmatprep.mubr.msk.f32.mxu0 %vm575_vm1, %v574_v0  ;;  %v118_v16 = vld [vmem:[%s850_s3 + $0x10] sm:$0xff]  ;;  %v117_v17 = vld [vmem:[%s850_s3 + $0x8] sm:$0xff]  ;;  %v116_v18 = vld [vmem:[%s850_s3] sm:$0xff] }
   0x7   :  { %472 = vmatpush3.msra.mxu1 %v129_v5  ;;  %v225_v19 = vld [vmem:[%s851_s5 + $0x78] sm:$0xff]  ;;  %v224_v20 = vld [vmem:[%s851_s5 + $0x70] sm:$0xff]  ;;  %v223_v21 = vld [vmem:[%s851_s5 + $0x68] sm:$0xff] }
   0x8   :  { %473 = vmatprep.subr.mxu1 %v574_v0  ;;  %503 = vmatpush3.msra.mxu0 %v225_v19  ;;  %v222_v22 = vld [vmem:[%s851_s5 + $0x60] sm:$0xff]  ;;  %v221_v23 = vld [vmem:[%s851_s5 + $0x58] sm:$0xff]  ;;  %v220_v24 = vld [vmem:[%s851_s5 + $0x50] sm:$0xff] }
   0x9   :  { %474 = vmatpush3.msra.mxu1 %v128_v6  ;;  %504 = vmatprep.subr.mxu0 %v574_v0  ;;  %v219_v25 = vld [vmem:[%s851_s5 + $0x48] sm:$0xff]  ;;  %v218_v26 = vld [vmem:[%s851_s5 + $0x40] sm:$0xff]  ;;  %v217_v27 = vld [vmem:[%s851_s5 + $0x38] sm:$0xff] }
   0xa   :  { %475 = vmatprep.subr.mxu1 %v574_v0  ;;  %505 = vmatpush3.msra.mxu0 %v224_v20  ;;  %v216_v28 = vld [vmem:[%s851_s5 + $0x30] sm:$0xff]  ;;  %v215_v29 = vld [vmem:[%s851_s5 + $0x28] sm:$0xff]  ;;  %v214_v30 = vld [vmem:[%s851_s5 + $0x20] sm:$0xff] }
   0xb   :  { %476 = vmatpush3.msra.mxu1 %v127_v7  ;;  %506 = vmatprep.subr.mxu0 %v574_v0  ;;  %v213_v31 = vld [vmem:[%s851_s5 + $0x18] sm:$0xff]  ;;  %v404_v32 = vld [vmem:[%s852_s2] ss:$0 sm:$0xff]  ;;  %v212_v37 = vld [vmem:[%s851_s5 + $0x10] sm:$0xff] }
   0xc   :  { %477 = vmatprep.subr.mxu1 %v574_v0  ;;  %507 = vmatpush3.msra.mxu0 %v223_v21  ;;  %v211_v38 = vld [vmem:[%s851_s5 + $0x8] sm:$0xff]  ;;  %v210_v39 = vld [vmem:[%s851_s5] sm:$0xff]  ;;  %v319_v40 = vld [vmem:[%s853_s7 + $0x78] sm:$0xff] }
   0xd   :  { %478 = vmatpush3.msra.mxu1 %v126_v8  ;;  %508 = vmatprep.subr.mxu0 %v574_v0  ;;  %v318_v41 = vld [vmem:[%s853_s7 + $0x70] sm:$0xff]  ;;  %v317_v42 = vld [vmem:[%s853_s7 + $0x68] sm:$0xff]  ;;  %v316_v43 = vld [vmem:[%s853_s7 + $0x60] sm:$0xff] }
   0xe   :  { %479 = vmatprep.subr.mxu1 %v574_v0  ;;  %509 = vmatpush3.msra.mxu0 %v222_v22  ;;  %v315_v44 = vld [vmem:[%s853_s7 + $0x58] sm:$0xff]  ;;  %v314_v45 = vld [vmem:[%s853_s7 + $0x50] sm:$0xff]  ;;  %v313_v46 = vld [vmem:[%s853_s7 + $0x48] sm:$0xff] }
   0xf   :  { %480 = vmatpush3.msra.mxu1 %v125_v9  ;;  %510 = vmatprep.subr.mxu0 %v574_v0  ;;  %v312_v47 = vld [vmem:[%s853_s7 + $0x40] sm:$0xff]  ;;  %v311_v48 = vld [vmem:[%s853_s7 + $0x38] sm:$0xff]  ;;  %v310_v49 = vld [vmem:[%s853_s7 + $0x30] sm:$0xff] }
  0x10   :  { %481 = vmatprep.subr.mxu1 %v574_v0  ;;  %511 = vmatpush3.msra.mxu0 %v221_v23  ;;  %v309_v50 = vld [vmem:[%s853_s7 + $0x28] sm:$0xff]  ;;  %v308_v51 = vld [vmem:[%s853_s7 + $0x20] sm:$0xff]  ;;  %v307_v52 = vld [vmem:[%s853_s7 + $0x18] sm:$0xff] }
  0x11   :  { %482 = vmatpush3.msra.mxu1 %v124_v10  ;;  %512 = vmatprep.subr.mxu0 %v574_v0  ;;  %v406_v53 = vld [vmem:[%s854_s4] ss:$0 sm:$0xff]  ;;  %v306_v58 = vld [vmem:[%s853_s7 + $0x10] sm:$0xff]  ;;  %v305_v59 = vld [vmem:[%s853_s7 + $0x8] sm:$0xff] }
  0x12   :  { %483 = vmatprep.subr.mxu1 %v574_v0  ;;  %513 = vmatpush3.msra.mxu0 %v220_v24  ;;  %v304_v60 = vld [vmem:[%s853_s7] sm:$0xff] }
  0x13   :  { %484 = vmatpush3.msra.mxu1 %v123_v11  ;;  %514 = vmatprep.subr.mxu0 %v574_v0  ;;  %v407_v61 = vld [vmem:[%s855_s6] ss:$0 sm:$0xff] }
  0x14   :  { %485 = vmatprep.subr.mxu1 %v574_v0  ;;  %515 = vmatpush3.msra.mxu0 %v219_v25  ;;  %v408_v3 = vld [vmem:[%s856_s8] ss:$0 sm:$0xff] }
  0x15   :  { %486 = vmatpush3.msra.mxu1 %v122_v12  ;;  %516 = vmatprep.subr.mxu0 %v574_v0 }
  0x16   :  { %487 = vmatprep.subr.mxu1 %v574_v0  ;;  %517 = vmatpush3.msra.mxu0 %v218_v26 }
  0x17   :  { %488 = vmatpush3.msra.mxu1 %v121_v13  ;;  %518 = vmatprep.subr.mxu0 %v574_v0 }
  0x18   :  { %489 = vmatprep.subr.mxu1 %v574_v0  ;;  %519 = vmatpush3.msra.mxu0 %v217_v27 }
  0x19   :  { %490 = vmatpush3.msra.mxu1 %v120_v14  ;;  %520 = vmatprep.subr.mxu0 %v574_v0 }
  0x1a   :  { %491 = vmatprep.subr.mxu1 %v574_v0  ;;  %521 = vmatpush3.msra.mxu0 %v216_v28 }
  0x1b   :  { %492 = vmatpush3.msra.mxu1 %v119_v15  ;;  %522 = vmatprep.subr.mxu0 %v574_v0 }
  0x1c   :  { %493 = vmatprep.subr.mxu1 %v574_v0  ;;  %523 = vmatpush3.msra.mxu0 %v215_v29 }
  0x1d   :  { %494 = vmatpush3.msra.mxu1 %v118_v16  ;;  %524 = vmatprep.subr.mxu0 %v574_v0 }
  0x1e   :  { %495 = vmatprep.subr.mxu1 %v574_v0  ;;  %525 = vmatpush3.msra.mxu0 %v214_v30 }
  0x1f   :  { %496 = vmatpush3.msra.mxu1 %v117_v17  ;;  %526 = vmatprep.subr.mxu0 %v574_v0 }
  0x20   :  { %497 = vmatprep.subr.mxu1 %v574_v0  ;;  %527 = vmatpush3.msra.mxu0 %v213_v31 }
  0x21   :  { %498 = vmatpush3.msra.mxu1 %v116_v18  ;;  %528 = vmatprep.subr.mxu0 %v574_v0 }
  0x22   :  { %537 = vmatprep.subr.mxu1 %v574_v0  ;;  %529 = vmatpush3.msra.mxu0 %v212_v37 }
  0x23   :  { %530 = vmatprep.subr.mxu0 %v574_v0 }
  0x24   :  { %531 = vmatpush3.msra.mxu0 %v211_v38 }
  0x25   :  { %532 = vmatprep.subr.mxu0 %v574_v0 }
  0x26   :  { %533 = vmatpush3.msra.mxu0 %v210_v39 }
  0xc3   :  { %v111_v33 = vpop.f32.mrf.mxu0 }
  0xc4   :  { %v112_v34 = vadd.f32 %v404_v32, %v111_v33 }
  0xc5   :  { %v466_v35 = vpop.f32.mrf.mxu0 }
  0xc6   :  { %v115_v36 = vmax.f32 %v112_v34, 0.0 }
  0xc8   :  { %500 = vmatmul.mubr.f32.vlgmr.msra.gmra.mxu1 %v115_v36 }
  0xc9   :  { %569 = vmatprep.mubr.msk.f32.mxu1 %vm575_vm1, %v574_v0  ;;  %538 = vmatpush3.msra.mxu1 %v319_v40 }
  0xca   :  { %539 = vmatprep.subr.mxu1 %v574_v0 }
  0xcb   :  { %540 = vmatpush3.msra.mxu1 %v318_v41 }
  0xcc   :  { %541 = vmatprep.subr.mxu1 %v574_v0 }
  0xcd   :  { %542 = vmatpush3.msra.mxu1 %v317_v42 }
  0xce   :  { %543 = vmatprep.subr.mxu1 %v574_v0 }
  0xcf   :  { %544 = vmatpush3.msra.mxu1 %v316_v43 }
  0xd0   :  { %545 = vmatprep.subr.mxu1 %v574_v0 }
  0xd1   :  { %546 = vmatpush3.msra.mxu1 %v315_v44 }
  0xd2   :  { %547 = vmatprep.subr.mxu1 %v574_v0 }
  0xd3   :  { %548 = vmatpush3.msra.mxu1 %v314_v45 }
  0xd4   :  { %549 = vmatprep.subr.mxu1 %v574_v0 }
  0xd5   :  { %550 = vmatpush3.msra.mxu1 %v313_v46 }
  0xd6   :  { %551 = vmatprep.subr.mxu1 %v574_v0 }
  0xd7   :  { %552 = vmatpush3.msra.mxu1 %v312_v47 }
  0xd8   :  { %553 = vmatprep.subr.mxu1 %v574_v0 }
  0xd9   :  { %554 = vmatpush3.msra.mxu1 %v311_v48 }
  0xda   :  { %555 = vmatprep.subr.mxu1 %v574_v0 }
  0xdb   :  { %556 = vmatpush3.msra.mxu1 %v310_v49 }
  0xdc   :  { %557 = vmatprep.subr.mxu1 %v574_v0 }
  0xdd   :  { %558 = vmatpush3.msra.mxu1 %v309_v50 }
  0xde   :  { %559 = vmatprep.subr.mxu1 %v574_v0 }
  0xdf   :  { %560 = vmatpush3.msra.mxu1 %v308_v51 }
  0xe0   :  { %561 = vmatprep.subr.mxu1 %v574_v0 }
  0xe1   :  { %562 = vmatpush3.msra.mxu1 %v307_v52 }
  0xe2   :  { %563 = vmatprep.subr.mxu1 %v574_v0 }
  0xe3   :  { %564 = vmatpush3.msra.mxu1 %v306_v58 }
  0xe4   :  { %565 = vmatprep.subr.mxu1 %v574_v0 }
  0xe5   :  { %566 = vmatpush3.msra.mxu1 %v305_v59 }
  0xe6   :  { %567 = vmatprep.subr.mxu1 %v574_v0 }
  0xe7   :  { %568 = vmatpush3.msra.mxu1 %v304_v60 }
 0x188   :  { %v205_v54 = vpop.f32.mrf.mxu1 }
 0x189   :  { %v206_v55 = vadd.f32 %v406_v53, %v205_v54 }
 0x18a   :  { %v501_v56 = vpop.f32.mrf.mxu1 }
 0x18b   :  { %v209_v57 = vmax.f32 %v206_v55, 0.0 }
 0x18d   :  { %535 = vmatmul.mubr.f32.vlgmr.msra.gmra.mxu0 %v209_v57 }
 0x24d   :  { %v299_v62 = vpop.f32.mrf.mxu0 }
 0x24e   :  { %v300_v63 = vadd.f32 %v407_v61, %v299_v62 }
 0x24f   :  { %v536_v1 = vpop.f32.mrf.mxu0 }
 0x250   :  { %v303_v2 = vmax.f32 %v300_v63, 0.0 }
 0x252   :  { %570 = vmatmul.mubr.f32.vlgmr.msra.gmra.mxu1 %v303_v2 }
 0x312   :  { %v393_v4 = vpop.f32.mrf.mxu1 }
 0x313   :  { %v394_v0 = vadd.f32 %v408_v3, %v393_v4 }
 0x314   :  { %v571_v5 = vpop.f32.mrf.mxu1 }
 0x315   :  { %v397_v6 = vmax.f32 %v394_v0, 1e-06 }
 0x317   :  { %v398_v7 = vmin.f32 %v397_v6, 5.0 }
 0x319   :  { %399 = vst [vmem:[%s857_s9] sm:$0xff] %v398_v7 }

</bundles_post_ra>
